<compile_context>
chip_gen: v6e
topology: v6e:2x2x1
jax: 0.10.0
libtpu: 0.0.40
codegen_flags: <defaults>
</compile_context>

<pallas_src>
import functools

import numpy as np
import jax
import jax.numpy as jnp
from jax.experimental import pallas as pl
from jax.experimental.pallas import tpu as pltpu


# ----- minimal stand-in for the PyTorch `Config` the module expects -----
class Config:
    IMAGE_RESOLUTION = 16
    NUM_SDFS = 2
    THETA_MAX = 90.0
    INTENSITIES = np.array([0.3, 0.5])


def intensities_forward(config, bandwidth=0.05):
    """Intensities.forward, non-learnable path: default + clamp(0*INTENSITIES,-1,1)*bandwidth."""
    inty = np.zeros((config.NUM_SDFS,), np.float64)
    default = np.asarray(config.INTENSITIES, np.float64)
    return jnp.asarray(default + np.clip(inty, -1.0, 1.0) * bandwidth, dtype=jnp.float32)


def _kornia_rot2d(theta_deg, cx, cy):
    """kornia.get_rotation_matrix2d(center=(cx,cy), angle=theta, scale=1) -> 2x3 float64."""
    a = np.deg2rad(theta_deg)
    al, be = np.cos(a), np.sin(a)
    return np.array([[al, be, (1.0 - al) * cx - be * cy],
                     [-be, al, be * cx + (1.0 - al) * cy]], dtype=np.float64)


def _build_projection_np(thetas_deg, R, offset):
    """Fold rot2d + warp_affine(bilinear, zero pad) + dst-row-sum + 1/R into
    P_T[k, t*R + r], k = flattened (src_row, src_col):
        result[t, r] = sum_k canvas_flat[t, k] * P_T[k, t*R + r]
    Pure geometry -> computed on host with numpy (float64), baked as an f32 constant."""
    thetas = np.asarray(thetas_deg, np.float64) + float(offset)
    T = thetas.shape[0]
    ang = np.deg2rad(thetas)
    ca, sa = np.cos(ang), np.sin(ang)
    # center exactly as the torch module passes it: (IMAGE_RESOLUTION/2, IMAGE_RESOLUTION/2)
    # TODO(synk): kornia pixel-center conventions could imply (R-1)/2; not independently
    # validated against kornia here (no torch/kornia in-script) — we follow the module's args.
    cx = cy = R / 2.0
    yd, xd = np.meshgrid(np.arange(R, dtype=np.float64),
                         np.arange(R, dtype=np.float64), indexing="ij")      # (R,R) dst coords
    # warp_affine samples src at M^{-1} @ [x_d, y_d, 1]; closed-form inverse of the
    # rotation-about-center matrix is the rotation by -theta about the same center.
    xs = ca[:, None, None] * xd - sa[:, None, None] * yd \
        + ((1.0 - ca) * cx + sa * cy)[:, None, None]                          # (T,R,R)
    ys = sa[:, None, None] * xd + ca[:, None, None] * yd \
        + (-sa * cx + (1.0 - ca) * cy)[:, None, None]                         # (T,R,R)
    idx = np.arange(R, dtype=np.float64)
    # bilinear tent weights; out-of-range source pixels naturally get weight 0 (zero padding)
    wy = np.maximum(0.0, 1.0 - np.abs(idx[None, None, None, :] - ys[..., None]))  # (T,R,R,Rsrc)
    wx = np.maximum(0.0, 1.0 - np.abs(idx[None, None, None, :] - xs[..., None]))  # (T,R,R,Rsrc)
    # sum over destination columns c (the final row-sum) while forming the bilinear outer
    # product; fold 1/R; flatten source pixels (row-major) into the contraction axis.
    P = np.einsum("trci,trcj->trij", wy, wx) * (1.0 / R)                      # (T,R,Rs,Rs)
    P = P.reshape(T, R, R * R)
    # pre-transpose for the MXU: (R*R, T*R), column index = t*R + r
    return np.ascontiguousarray(P.transpose(2, 0, 1).reshape(R * R, T * R)).astype(np.float32)


@functools.lru_cache(maxsize=None)
def _projection_device(thetas_key, R, offset):
    """Constant-fold: built once on host, cached as a device array (no per-call rebuild)."""
    return jnp.asarray(_build_projection_np(np.array(thetas_key, np.float64), R, offset))


def _renderer_kernel(inty_ref, sdf_ref, p_ref, out_ref, *, S):
    # inty_ref: SMEM (S,) f32            -- loop-invariant scalars
    # sdf_ref : VMEM (S, T, R*R) f32     -- lane-dense trailing dim (2 vregs/row at R=16)
    # p_ref   : VMEM (R*R, T*R) f32      -- projection, 1/R folded, pre-transposed for MXU
    # out_ref : VMEM (T, T*R) f32        -- single unmasked lane-dense (8,128) store
    # 50*(sigmoid(x)-0.5) == 25*tanh(x/2): one EUP op per vreg instead of exp + reciprocal.
    occ = jnp.clip(25.0 * jnp.tanh(0.5 * sdf_ref[...]), 0.0, 1.0)            # (S,T,R*R)
    # unrolled channel-weighted sum (S is a compile-time constant, typically 2)
    canvas = occ[0] * inty_ref[0]
    for s in range(1, S):
        canvas = canvas + occ[s] * inty_ref[s]                                # (T,R*R)
    # single MXU pass; the wanted per-theta results are the diagonal R-blocks of the
    # (T, T*R) product, extracted by the caller (keeps the store full-width).
    out_ref[...] = jnp.dot(canvas, p_ref[...], preferred_element_type=jnp.float32)


def renderer_forward(sdf_vals, intensities, all_thetas_deg, offset=0.0):
    """sdf_vals: (S, T, R, R) float32 (channel-major, as the producer emits it);
    intensities: (S,) float32; all_thetas_deg: 1D numpy array of degrees.
    Returns the (R, T) intensity matrix, matching PyTorch Renderer.forward."""
    S, T, R, _ = sdf_vals.shape
    thetas = np.asarray(all_thetas_deg, np.float64)
    assert all(abs(float(t)) <= Config.THETA_MAX for t in thetas), "theta out of range"

    p_t = _projection_device(tuple(float(t) for t in thetas), int(R), float(offset))  # (R*R,T*R)
    sdf_flat = sdf_vals.astype(jnp.float32).reshape(S, T, R * R)   # trailing-dim merge only
    inty = intensities.astype(jnp.float32).reshape(S)

    # Scaling guard: working set ~150 KiB at R=16/T=8, far under every generation's scoped
    # VMEM limit. If R/T grow (P = R*R * T*R * 4 bytes; R=128 alone exceeds v7x's 64 MiB),
    # switch to a theta-blocked grid:
    #   grid=(T,), P spec pl.BlockSpec((R*R, R), lambda t: (0, t)), sdf spec (S, 1, R*R),
    #   dimension_semantics=("parallel",), vmem_limit_bytes via pltpu.CompilerParams.
    # TODO(synk): implement the blocked path when this guard trips.
    assert (R * R) * (T * R) * 4 + S * T * R * R * 4 < (8 << 20), \
        "working set too large for the grid-less kernel; add a theta-blocked grid"

    cost = pl.CostEstimate(
        flops=2 * T * (R * R) * (T * R) + 3 * S * T * R * R,
        transcendentals=S * T * R * R,
        bytes_accessed=(R * R) * (T * R) * 4 + S * T * R * R * 4 + S * 4 + T * (T * R) * 4,
    )

    g = pl.pallas_call(
        functools.partial(_renderer_kernel, S=S),
        out_shape=jax.ShapeDtypeStruct((T, T * R), jnp.float32),
        in_specs=[
            pl.BlockSpec(memory_space=pltpu.MemorySpace.SMEM),   # intensities scalars
            pl.BlockSpec(memory_space=pltpu.MemorySpace.VMEM),   # SDF field (whole)
            pl.BlockSpec(memory_space=pltpu.MemorySpace.VMEM),   # projection P_T (whole)
        ],
        out_specs=pl.BlockSpec(memory_space=pltpu.MemorySpace.VMEM),
        cost_estimate=cost,
    )(inty, sdf_flat, p_t)

    # diag-extract + transpose fused into one op: (T, T*R) -> (T, T, R) --diag--> (R, T)
    return jnp.diagonal(g.reshape(T, T, R), axis1=0, axis2=1)


def _reference_forward_np(sdf_vals, intensities, thetas_deg, offset, R):
    """Independent pure-numpy float64 reference: per-theta explicit bilinear warp using the
    numerically inverted kornia rotation matrix (NOT the folded projection tensor), then
    dst-row-sum / R. Validates the P-folding path, not just the contraction."""
    sdf = np.asarray(sdf_vals, np.float64)                       # (S,T,R,R)
    inten = np.asarray(intensities, np.float64)                  # (S,)
    occ = np.clip(50.0 * (1.0 / (1.0 + np.exp(-sdf)) - 0.5), 0.0, 1.0)
    canvas = np.einsum("strc,s->trc", occ, inten)                # (T,R,R)
    T = canvas.shape[0]
    yd, xd = np.meshgrid(np.arange(R, dtype=np.float64),
                         np.arange(R, dtype=np.float64), indexing="ij")
    out = np.zeros((R, T), np.float64)
    for t in range(T):
        M = _kornia_rot2d(float(thetas_deg[t]) + float(offset), R / 2.0, R / 2.0)
        Minv = np.linalg.inv(np.vstack([M, [0.0, 0.0, 1.0]]))
        xs = Minv[0, 0] * xd + Minv[0, 1] * yd + Minv[0, 2]
        ys = Minv[1, 0] * xd + Minv[1, 1] * yd + Minv[1, 2]
        x0 = np.floor(xs).astype(np.int64)
        y0 = np.floor(ys).astype(np.int64)
        warped = np.zeros((R, R), np.float64)
        for dy in (0, 1):
            for dx in (0, 1):
                yi, xi = y0 + dy, x0 + dx
                w = (1.0 - np.abs(ys - yi)) * (1.0 - np.abs(xs - xi))
                valid = (yi >= 0) & (yi < R) & (xi >= 0) & (xi < R)
                vals = np.where(valid,
                                canvas[t][np.clip(yi, 0, R - 1), np.clip(xi, 0, R - 1)],
                                0.0)
                warped += w * vals
        out[:, t] = warped.sum(axis=1) / R                       # sum over dst columns
    return out


if __name__ == "__main__":
    cfg = Config()
    R, S = cfg.IMAGE_RESOLUTION, cfg.NUM_SDFS
    T = 8
    # angles in degrees, |theta| <= THETA_MAX as asserted by the module
    all_thetas = np.linspace(-60.0, 60.0, T).astype(np.float64)

    key = jax.random.PRNGKey(0)
    # TODO(synk): SDF.forward is abstract (raises NotImplementedError) in the PyTorch module;
    # substitute a deterministic synthetic per-theta signed-distance field, emitted directly
    # in the channel-major (S, T, R, R) layout the kernel consumes (no wrapper transposes).
    sdf_vals = jax.random.normal(key, (S, T, R, R), dtype=jnp.float32)

    inten = intensities_forward(cfg)                      # (S,) = [0.3, 0.5]
    out = renderer_forward(sdf_vals, inten, all_thetas, offset=0.0)
    out = jax.block_until_ready(out)
    assert out.shape == (R, T), out.shape

    ref = _reference_forward_np(np.asarray(sdf_vals), np.asarray(inten), all_thetas, 0.0, R)
    np.testing.assert_allclose(np.asarray(out), ref, rtol=1e-4, atol=5e-5)

    print("KERNEL_OK")
</pallas_src>

<mosaic_0001>
module attributes {stable_mosaic.version = 11 : i64} {
  func.func @_renderer_kernel(%arg0: memref<2xf32, #tpu.memory_space<smem>>, %arg1: memref<2x8x256xf32, #tpu.memory_space<vmem>>, %arg2: memref<256x128xf32, #tpu.memory_space<vmem>>, %arg3: memref<8x128xf32, #tpu.memory_space<vmem>>) attributes {dimension_semantics = [], scalar_prefetch = 0 : i64, scratch_operands = 0 : i64, tpu.core_type = #tpu.core_type<tc>} {
    %c0 = arith.constant 0 : index
    %c0_0 = arith.constant 0 : index
    %c0_1 = arith.constant 0 : index
    %0 = vector.load %arg1[%c0, %c0_0, %c0_1] : memref<2x8x256xf32, #tpu.memory_space<vmem>>, vector<2x8x256xf32>
    %cst = arith.constant 5.000000e-01 : f32
    %1 = vector.broadcast %cst : f32 to vector<2x8x256xf32>
    %2 = arith.mulf %1, %0 : vector<2x8x256xf32>
    %3 = math.tanh %2 : vector<2x8x256xf32>
    %cst_2 = arith.constant 2.500000e+01 : f32
    %4 = vector.broadcast %cst_2 : f32 to vector<2x8x256xf32>
    %5 = arith.mulf %4, %3 : vector<2x8x256xf32>
    %cst_3 = arith.constant 0.000000e+00 : f32
    %cst_4 = arith.constant 1.000000e+00 : f32
    %6 = vector.broadcast %cst_3 : f32 to vector<2x8x256xf32>
    %7 = arith.maximumf %6, %5 : vector<2x8x256xf32>
    %8 = vector.broadcast %cst_4 : f32 to vector<2x8x256xf32>
    %9 = arith.minimumf %8, %7 : vector<2x8x256xf32>
    %10 = vector.extract_strided_slice %9 {offsets = [0, 0, 0], sizes = [1, 8, 256], strides = [1, 1, 1]} : vector<2x8x256xf32> to vector<1x8x256xf32>
    %11 = vector.shape_cast %10 : vector<1x8x256xf32> to vector<8x256xf32>
    %c0_5 = arith.constant 0 : index
    %12 = memref.load %arg0[%c0_5] : memref<2xf32, #tpu.memory_space<smem>>
    %13 = vector.broadcast %12 : f32 to vector<8x256xf32>
    %14 = arith.mulf %11, %13 : vector<8x256xf32>
    %15 = vector.extract_strided_slice %9 {offsets = [1, 0, 0], sizes = [1, 8, 256], strides = [1, 1, 1]} : vector<2x8x256xf32> to vector<1x8x256xf32>
    %16 = vector.shape_cast %15 : vector<1x8x256xf32> to vector<8x256xf32>
    %c1 = arith.constant 1 : index
    %17 = memref.load %arg0[%c1] : memref<2xf32, #tpu.memory_space<smem>>
    %18 = vector.broadcast %17 : f32 to vector<8x256xf32>
    %19 = arith.mulf %16, %18 : vector<8x256xf32>
    %20 = arith.addf %14, %19 : vector<8x256xf32>
    %c0_6 = arith.constant 0 : index
    %c0_7 = arith.constant 0 : index
    %21 = vector.load %arg2[%c0_6, %c0_7] : memref<256x128xf32, #tpu.memory_space<vmem>>, vector<256x128xf32>
    %cst_8 = arith.constant dense<0.000000e+00> : vector<8x128xf32>
    %22 = tpu.matmul %20, %21, %cst_8 {dimension_numbers = #tpu.dot_dimension_numbers<[1], [0], [0], [1], [0, 0, 1, 1], [], []>} : vector<8x256xf32>, vector<256x128xf32>, vector<8x128xf32> -> vector<8x128xf32>
    %c0_9 = arith.constant 0 : index
    %c0_10 = arith.constant 0 : index
    %23 = vector.load %arg3[%c0_9, %c0_10] : memref<8x128xf32, #tpu.memory_space<vmem>>, vector<8x128xf32>
    tpu.vector_store %arg3[%c0_9, %c0_10], %22 {strides = array<i32>} : memref<8x128xf32, #tpu.memory_space<vmem>>, vector<8x128xf32>,
    return
  }
}

</mosaic_0001>

<bundles_post_ra>
// kernel: tpu_custom_call.1
= control target key start
LH: loop header
LB: loop body
LE: loop exit
PB: predicated region body
PF: predicated region fallthrough
CT: control target
= control target key end

     0   :  { %8 = vsyncpa [#allocation5], 0  ;;  %s382_s0 = inlined_call_operand.hbm [shape: f32[2], index: 0, kind: input, shape index: {}]   ;;  %s383_s1 = inlined_call_operand.hbm [shape: f32[2,8,256], index: 1, kind: input, shape index: {}]   ;;  %s384_s2 = inlined_call_operand.hbm [shape: f32[256,128], index: 2, kind: input, shape index: {}]   ;;  %s385_s3 = inlined_call_operand.hbm [shape: f32[8,128], index: 3, kind: output, shape index: {}]  }
   0x1   :  { %9 = vsyncpa [#allocation3], 0 }
   0x2   :  { %10 = vsyncpa [#allocation8], 0 }
   0x3   :  { %11 = vsyncpa [#allocation4], 0  ;;  %s336_s12 = smov [#allocation2]   ;;  %s337_s15 = smov [#allocation6]  }
   0x4   :  { %19 = dma.hbm_to_smem %s382_s0, 16, %s336_s12, [#allocation5]  }
   0x5   :  { %s25_s16 = sshll.u32 %s337_s15, 4  ;;  %s26_s16 = int_to_ptr.vmem [resolvable:$true] %s25_s16 }
   0x6   :  { %s276_s17 = scalar_lea.vmem %s26_s16, 512  ;;  %p281_p1 = scmp.lt.s32.totalorder %s26_s16, %s26_s16 }
   0x7   :  { %p277_p0 = scmp.ne.s32.totalorder %s26_s16, %s276_s17  ;;  %p282_p2 = scmp.lt.s32.totalorder %s276_s17, %s276_s17 }
   0x9   :  { %p283_p3 = por %p282_p2, %p281_p1 }
   0xb   :  { %p284_p4 = pnand %p283_p3, %p277_p0 }
   0xd   :  { %287 = shalt.err (!%p284_p4)
}
   0xe   :  { %s338_s18 = smov 256   ;;  %s339_s19 = smov 16  }
   0xf   :  { %31 = dma.hbm_to_vmem [thread:$0]  %s383_s1, 512, %s26_s16, [#allocation3], %s338_s18, %s338_s18, %s339_s19  }
  0x10   :  { %s340_s22 = smov [#allocation7]  }
  0x11   :  { %s37_s23 = sshll.u32 %s340_s22, 4  ;;  %s38_s23 = int_to_ptr.vmem [resolvable:$true] %s37_s23 }
  0x12   :  { %s296_s0 = scalar_lea.vmem %s38_s23, 4096  ;;  %p301_p6 = scmp.lt.s32.totalorder %s38_s23, %s38_s23 }
  0x13   :  { %p297_p5 = scmp.ne.s32.totalorder %s38_s23, %s296_s0  ;;  %p302_p7 = scmp.lt.s32.totalorder %s296_s0, %s296_s0 }
  0x15   :  { %p303_p8 = por %p302_p7, %p301_p6 }
  0x17   :  { %p304_p9 = pnand %p303_p8, %p297_p5 }
  0x19   :  { %307 = shalt.err (!%p304_p9)
}
  0x1a   :  { %s341_s24 = smov 128   ;;  %s342_s25 = smov 8  }
  0x1b   :  { %43 = dma.hbm_to_vmem [thread:$0]  %s384_s2, 4096, %s38_s23, [#allocation8], %s341_s24, %s341_s24, %s342_s25  }
  0x1c   :  { %328 = dma.done.wait [#allocation5], 16  }
  0x1d   :  { %329 = vsyncadd [#allocation5], 4294967280 }
  0x1e   :  { %330 = dma.done.wait [#allocation3], 512  }
  0x1f   :  { %331 = vsyncadd [#allocation3], 4294966784 }
  0x20   :  { %332 = dma.done.wait [#allocation8], 4096  }
  0x21   :  { %333 = vsyncadd [#allocation8], 4294963200 }
  0x22   :  { %53 = sfence }
  0x23   :  { %v119_v0 = vld [vmem:[#allocation7 + $0xf8] sm:$0xff]  ;;  %v118_v2 = vld [vmem:[#allocation7 + $0xf0] sm:$0xff]  ;;  %v117_v4 = vld [vmem:[#allocation7 + $0xe8] sm:$0xff]  ;;  %s373_s1 = sld [smem:[#allocation2]]  ;;  %s343_s28 = smov [#allocation9]  }
  0x24   :  { %v103_v1 = vld [vmem:[#allocation7 + $0x78] sm:$0xff]  ;;  %209 = vmatprep.subr.mxu0 %v119_v0  ;;  %v102_v3 = vld [vmem:[#allocation7 + $0x70] sm:$0xff]  ;;  %v101_v5 = vld [vmem:[#allocation7 + $0x68] sm:$0xff]  ;;  %s375_s2 = sld [smem:[#allocation2 + $0x1]]  ;;  %s197_s29 = sshll.u32 %s343_s28, 4  ;;  %s198_s29 = int_to_ptr.vmem [resolvable:$true] %s197_s29 }
  0x25   :  { %210 = vmatpush3.msra.mxu0 %v103_v1  ;;  %v116_v6 = vld [vmem:[#allocation7 + $0xe0] sm:$0xff]  ;;  %v115_v8 = vld [vmem:[#allocation7 + $0xd8] sm:$0xff]  ;;  %v114_v10 = vld [vmem:[#allocation7 + $0xd0] sm:$0xff]  ;;  %s308_s30 = scalar_lea.vmem %s198_s29, 128  ;;  %p313_p11 = scmp.lt.s32.totalorder %s198_s29, %s198_s29 }
  0x26   :  { %211 = vmatprep.subr.mxu0 %v118_v2  ;;  %v100_v7 = vld [vmem:[#allocation7 + $0x60] sm:$0xff]  ;;  %v99_v9 = vld [vmem:[#allocation7 + $0x58] sm:$0xff]  ;;  %v98_v11 = vld [vmem:[#allocation7 + $0x50] sm:$0xff]  ;;  %p309_p10 = scmp.ne.s32.totalorder %s198_s29, %s308_s30  ;;  %p314_p12 = scmp.lt.s32.totalorder %s308_s30, %s308_s30 }
  0x27   :  { %212 = vmatpush3.msra.mxu0 %v102_v3  ;;  %v113_v12 = vld [vmem:[#allocation7 + $0xc8] sm:$0xff]  ;;  %v54_v14 = vld [vmem:[#allocation6] sm:$0xff]  ;;  %v56_v16 = vld [vmem:[#allocation6 + $0x10] sm:$0xff] }
  0x28   :  { %213 = vmatprep.subr.mxu0 %v117_v4  ;;  %v97_v13 = vld [vmem:[#allocation7 + $0x48] sm:$0xff]  ;;  %v57_v17 = vld [vmem:[#allocation6 + $0x18] sm:$0xff]  ;;  %v58_v18 = vmul.f32 0.5, %v54_v14  ;;  %v112_v19 = vld [vmem:[#allocation7 + $0xc0] sm:$0xff]  ;;  %v60_v21 = vmul.f32 0.5, %v56_v16  ;;  %p315_p13 = por %p314_p12, %p313_p11 }
  0x29   :  { %214 = vmatpush3.msra.mxu0 %v101_v5  ;;  %v55_v15 = vld [vmem:[#allocation6 + $0x8] sm:$0xff]  ;;  %v61_v22 = vmul.f32 0.5, %v57_v17  ;;  %v96_v23 = vld [vmem:[#allocation7 + $0x40] sm:$0xff]  ;;  %v111_v24 = vld [vmem:[#allocation7 + $0xb8] sm:$0xff]  ;;  %v79_v50 = vstv %s373_s1 }
  0x2a   :  { %215 = vmatprep.subr.mxu0 %v116_v6  ;;  %v59_v20 = vmul.f32 0.5, %v55_v15  ;;  %252 = vtanh.f32 %v58_v18  ;;  %v95_v25 = vld [vmem:[#allocation7 + $0x38] sm:$0xff]  ;;  %v110_v26 = vld [vmem:[#allocation7 + $0xb0] sm:$0xff]  ;;  %v109_v28 = vld [vmem:[#allocation7 + $0xa8] sm:$0xff]  ;;  %v83_v55 = vstv %s375_s2  ;;  %p316_p0 = pnand %p315_p13, %p309_p10 }
  0x2b   :  { %216 = vmatpush3.msra.mxu0 %v100_v7  ;;  %v94_v27 = vld [vmem:[#allocation7 + $0x30] sm:$0xff]  ;;  %v93_v29 = vld [vmem:[#allocation7 + $0x28] sm:$0xff]  ;;  %v108_v30 = vld [vmem:[#allocation7 + $0xa0] sm:$0xff] }
  0x2c   :  { %217 = vmatprep.subr.mxu0 %v115_v8  ;;  %254 = vtanh.f32 %v59_v20  ;;  %v92_v31 = vld [vmem:[#allocation7 + $0x20] sm:$0xff]  ;;  %v107_v32 = vld [vmem:[#allocation7 + $0x98] sm:$0xff]  ;;  %v106_v34 = vld [vmem:[#allocation7 + $0x90] sm:$0xff] }
  0x2d   :  { %218 = vmatpush3.msra.mxu0 %v99_v9  ;;  %256 = vtanh.f32 %v60_v21  ;;  %v91_v33 = vld [vmem:[#allocation7 + $0x18] sm:$0xff]  ;;  %v90_v35 = vld [vmem:[#allocation7 + $0x10] sm:$0xff]  ;;  %v105_v37 = vld [vmem:[#allocation7 + $0x88] sm:$0xff] }
  0x2e   :  { %219 = vmatprep.subr.mxu0 %v114_v10  ;;  %258 = vtanh.f32 %v61_v22  ;;  %v89_v39 = vld [vmem:[#allocation7 + $0x8] sm:$0xff]  ;;  %v104_v42 = vld [vmem:[#allocation7 + $0x80] sm:$0xff] }
  0x2f   :  { %220 = vmatpush3.msra.mxu0 %v98_v11  ;;  %v88_v45 = vld [vmem:[#allocation7] sm:$0xff] }
  0x30   :  { %221 = vmatprep.subr.mxu0 %v113_v12 }
  0x31   :  { %222 = vmatpush3.msra.mxu0 %v97_v13 }
  0x32   :  { %223 = vmatprep.subr.mxu0 %v112_v19 }
  0x33   :  { %224 = vmatpush3.msra.mxu0 %v96_v23 }
  0x34   :  { %225 = vmatprep.subr.mxu0 %v111_v24 }
  0x35   :  { %226 = vmatpush3.msra.mxu0 %v95_v25 }
  0x36   :  { %227 = vmatprep.subr.mxu0 %v110_v26 }
  0x37   :  { %228 = vmatpush3.msra.mxu0 %v94_v27  ;;  %v253_v36 = vpop.eup %252 }
  0x38   :  { %229 = vmatprep.subr.mxu0 %v109_v28  ;;  %v66_v40 = vmul.f32 25.0, %v253_v36 }
  0x39   :  { %230 = vmatpush3.msra.mxu0 %v93_v29  ;;  %v255_v38 = vpop.eup %254 }
  0x3a   :  { %231 = vmatprep.subr.mxu0 %v108_v30  ;;  %v257_v41 = vpop.eup %256  ;;  %v67_v43 = vmul.f32 25.0, %v255_v38  ;;  %v70_v47 = vmax.f32 %v66_v40, 0.0 }
  0x3b   :  { %232 = vmatpush3.msra.mxu0 %v92_v31  ;;  %v259_v44 = vpop.eup %258  ;;  %v68_v46 = vmul.f32 25.0, %v257_v41 }
  0x3c   :  { %233 = vmatprep.subr.mxu0 %v107_v32  ;;  %v69_v48 = vmul.f32 25.0, %v259_v44  ;;  %v71_v49 = vmax.f32 %v67_v43, 0.0  ;;  %v74_v52 = vmin.f32 %v70_v47, 1.0 }
  0x3d   :  { %234 = vmatpush3.msra.mxu0 %v91_v33  ;;  %v72_v51 = vmax.f32 %v68_v46, 0.0 }
  0x3e   :  { %235 = vmatprep.subr.mxu0 %v106_v34  ;;  %v73_v53 = vmax.f32 %v69_v48, 0.0  ;;  %v75_v54 = vmin.f32 %v71_v49, 1.0  ;;  %v80_v57 = vmul.f32 %v79_v50, %v74_v52 }
  0x3f   :  { %236 = vmatpush3.msra.mxu0 %v90_v35  ;;  %v76_v56 = vmin.f32 %v72_v51, 1.0 }
  0x40   :  { %237 = vmatprep.subr.mxu0 %v105_v37  ;;  %v77_v58 = vmin.f32 %v73_v53, 1.0  ;;  %v81_v59 = vmul.f32 %v79_v50, %v75_v54 }
  0x41   :  { %238 = vmatpush3.msra.mxu0 %v89_v39  ;;  %v84_v60 = vmul.f32 %v83_v55, %v76_v56 }
  0x42   :  { %239 = vmatprep.subr.mxu0 %v104_v42  ;;  %v85_v61 = vmul.f32 %v83_v55, %v77_v58 }
  0x43   :  { %240 = vmatpush3.msra.mxu0 %v88_v45  ;;  %v86_v62 = vadd.f32 %v84_v60, %v80_v57 }
  0x44   :  { %v87_v63 = vadd.f32 %v85_v61, %v81_v59 }
  0x46   :  { %184 = vmatprep.mubr.f32.mxu0 %v87_v63 }
  0x47   :  { %185 = vmatmul.mubr.f32.vlgmr.msra.gmra.mxu0 %v86_v62 }
 0x107   :  { %v241_v0 = vpop.f32.mrf.mxu0 }
 0x109   :  { %v242_v1 = vpop.f32.mrf.mxu0 }
 0x10a   :  { %v243_v2 = vadd.f32 %v242_v1, %v241_v0 }
 0x10c   :  { %190 = vst [vmem:[#allocation9] sm:$0xff] %v243_v2 }
 0x10d   :  { %319 = shalt.err (!%p316_p0)
}
 0x10e   :  { %200 = dma.vmem_to_hbm [thread:$0]  %s198_s29, 128, %s385_s3, [#allocation4]  }
 0x10f   :  { %334 = dma.done.wait [#allocation4], 128  }
 0x110   :  { %335 = vsyncadd [#allocation4], 4294967168 }
 0x111   :  { %204 = vsyncpa [#allocation3], 1 }
 0x112   :  { %205 = vsyncpa [#allocation8], 1 }
 0x113   :  { %206 = vsyncpa [#allocation4], 1 }
 0x114   :  { %207 = vsyncpa [#allocation5], 1 }

</bundles_post_ra>
